<compile_context>
chip_gen: v5e
topology: v5e:2x2
jax: 0.10.0
libtpu: 0.0.40
codegen_flags: <defaults>
</compile_context>

<pallas_src>
import jax
import jax.numpy as jnp
from jax.experimental import pallas as pl
from jax.experimental.pallas import tpu as pltpu


# ---------------------------------------------------------------------------
# Kernels
# ---------------------------------------------------------------------------
def _row_scale_kernel(x_ref, s_ref, o_ref):
    # x_ref: (TR, TC) tile, s_ref: (TR, 1) per-row scale -> VPU lane broadcast.
    o_ref[...] = x_ref[...] * s_ref[...]


def _scalar_scale_kernel(s_ref, x_ref, o_ref):
    # s_ref: (1, 1) scalar living in SMEM.
    o_ref[...] = x_ref[...] * s_ref[0, 0]


def _elemwise_scale_kernel(x_ref, s_ref, o_ref):
    # Fully materialized (broadcastable) scale, same tiling as x.
    o_ref[...] = x_ref[...] * s_ref[...]


# ---------------------------------------------------------------------------
# Tile selection
# ---------------------------------------------------------------------------
def _sublane_align(dtype):
    itemsize = jnp.dtype(dtype).itemsize
    return 8 * max(1, 4 // itemsize)  # f32->8, bf16->16, int8/fp8->32


def _pick_tiles(rows, cols, dtype):
    """Lane-dense, sublane-aligned tiles targeting ~2 MiB x-blocks (f32)."""
    row_align = _sublane_align(dtype)
    # Lane axis: big tiles (multiple of 128) amortize the ~0.35us per-step
    # overhead and keep stores unmasked; full extent is always legal.
    tc = cols if cols <= 2048 else 2048
    # Sublane axis: a few hundred rows, aligned to the dtype packing.
    if rows <= 256:
        tr = rows
    else:
        tr = max(row_align, (256 // row_align) * row_align)
    return tr, tc


# ---------------------------------------------------------------------------
# Forward
# ---------------------------------------------------------------------------
def scale_forward(x, scale):
    """Pallas equivalent of Scale.forward.

    x:     (N, C, H, W) array (NCHW, matching PyTorch)
    scale: 0-D scalar, per-channel 1-D (C,), or any shape broadcastable to x
    """
    N, C, H, W = x.shape
    rows, cols = N * C, H * W
    dtype = x.dtype
    itemsize = jnp.dtype(dtype).itemsize
    scale = jnp.asarray(scale, dtype=dtype)

    x2d = x.reshape(rows, cols)
    tr, tc = _pick_tiles(rows, cols, dtype)
    grid = (pl.cdiv(rows, tr), pl.cdiv(cols, tc))

    x_spec = pl.BlockSpec((tr, tc), lambda i, j: (i, j))
    o_spec = pl.BlockSpec((tr, tc), lambda i, j: (i, j))
    compiler_params = pltpu.CompilerParams(
        dimension_semantics=("parallel", "parallel"))

    if scale.ndim == 1:
        # scale.unsqueeze(0).unsqueeze(2).unsqueeze(3).expand_as(x) * x
        # Row index = n*C + c (NCHW flatten order) => per-row scale column.
        assert scale.shape[0] == C, "1-D scale must have C entries"
        s_col = jnp.tile(scale, N).reshape(rows, 1)
        s_spec = pl.BlockSpec((tr, 1), lambda i, j: (i, 0))
        cost = pl.CostEstimate(
            flops=rows * cols,
            transcendentals=0,
            bytes_accessed=2 * rows * cols * itemsize + rows * itemsize)
        out2d = pl.pallas_call(
            _row_scale_kernel,
            out_shape=jax.ShapeDtypeStruct((rows, cols), dtype),
            grid=grid,
            in_specs=[x_spec, s_spec],
            out_specs=o_spec,
            compiler_params=compiler_params,
            cost_estimate=cost,
        )(x2d, s_col)
    elif scale.ndim == 0:
        # scalar * x : pass the scalar via SMEM (no broadcast column / extra
        # HBM stream per grid step).
        cost = pl.CostEstimate(
            flops=rows * cols,
            transcendentals=0,
            bytes_accessed=2 * rows * cols * itemsize)
        out2d = pl.pallas_call(
            _scalar_scale_kernel,
            out_shape=jax.ShapeDtypeStruct((rows, cols), dtype),
            grid=grid,
            in_specs=[
                pl.BlockSpec(memory_space=pltpu.MemorySpace.SMEM),
                x_spec,
            ],
            out_specs=o_spec,
            compiler_params=compiler_params,
            cost_estimate=cost,
        )(scale.reshape(1, 1), x2d)
    else:
        # General broadcastable scale (e.g. same shape as x): materialize the
        # broadcast and tile it exactly like x.
        s2d = jnp.broadcast_to(scale, x.shape).reshape(rows, cols)
        cost = pl.CostEstimate(
            flops=rows * cols,
            transcendentals=0,
            bytes_accessed=3 * rows * cols * itemsize)
        out2d = pl.pallas_call(
            _elemwise_scale_kernel,
            out_shape=jax.ShapeDtypeStruct((rows, cols), dtype),
            grid=grid,
            in_specs=[x_spec, x_spec],
            out_specs=o_spec,
            compiler_params=compiler_params,
            cost_estimate=cost,
        )(x2d, s2d)

    return out2d.reshape(N, C, H, W)


# ---------------------------------------------------------------------------
# Self-test
# ---------------------------------------------------------------------------
if __name__ == "__main__":
    key = jax.random.PRNGKey(0)
    kx, kx2 = jax.random.split(key)

    # Small shape consistent with the module (per-channel branch).
    N, C, H, W = 2, 4, 16, 16
    x = jax.random.normal(kx, (N, C, H, W), dtype=jnp.float32)
    scale_1d = jnp.arange(1, C + 1, dtype=jnp.float32) * 0.5  # shape (C,)

    out = scale_forward(x, scale_1d)
    jax.block_until_ready(out)
    ref = scale_1d.reshape(1, C, 1, 1) * x
    assert jnp.allclose(out, ref, atol=1e-6), "per-channel scale mismatch"

    # Scalar branch (SMEM path).
    scale_scalar = jnp.float32(1.7)
    out_s = scale_forward(x, scale_scalar)
    jax.block_until_ready(out_s)
    assert jnp.allclose(out_s, scale_scalar * x, atol=1e-6), "scalar mismatch"

    # Larger spatial shape to exercise the 2-D tiled grid (cols > one tile).
    x_big = jax.random.normal(kx2, (2, 4, 64, 64), dtype=jnp.float32)
    out_b = scale_forward(x_big, scale_1d)
    jax.block_until_ready(out_b)
    ref_b = scale_1d.reshape(1, C, 1, 1) * x_big
    assert jnp.allclose(out_b, ref_b, atol=1e-6), "tiled-grid mismatch"

    print("KERNEL_OK")
</pallas_src>

<mosaic_0001>
module attributes {stable_mosaic.version = 11 : i64} {
  func.func @_row_scale_kernel(%arg0: i32, %arg1: i32, %arg2: memref<8x256xf32, #tpu.memory_space<vmem>>, %arg3: memref<8x1xf32, #tpu.memory_space<vmem>>, %arg4: memref<8x256xf32, #tpu.memory_space<vmem>>) attributes {dimension_semantics = [#tpu.dimension_semantics<parallel>, #tpu.dimension_semantics<parallel>], iteration_bounds = array<i64: 1, 1>, scalar_prefetch = 0 : i64, scratch_operands = 0 : i64, tpu.core_type = #tpu.core_type<tc>, window_params = [{transform_indices = @transform_0, window_bounds = array<i64: 8, 256>}, {transform_indices = @transform_1, window_bounds = array<i64: 8, 1>}, {transform_indices = @transform_2, window_bounds = array<i64: 8, 256>}]} {
    %c0 = arith.constant 0 : index
    %c0_0 = arith.constant 0 : index
    %0 = vector.load %arg2[%c0, %c0_0] : memref<8x256xf32, #tpu.memory_space<vmem>>, vector<8x256xf32>
    %c0_1 = arith.constant 0 : index
    %c0_2 = arith.constant 0 : index
    %1 = vector.load %arg3[%c0_1, %c0_2] : memref<8x1xf32, #tpu.memory_space<vmem>>, vector<8x1xf32>
    %2 = vector.broadcast %1 : vector<8x1xf32> to vector<8x256xf32>
    %3 = arith.mulf %0, %2 : vector<8x256xf32>
    %c0_3 = arith.constant 0 : index
    %c0_4 = arith.constant 0 : index
    %4 = vector.load %arg4[%c0_3, %c0_4] : memref<8x256xf32, #tpu.memory_space<vmem>>, vector<8x256xf32>
    tpu.vector_store %arg4[%c0_3, %c0_4], %3 {strides = array<i32>} : memref<8x256xf32, #tpu.memory_space<vmem>>, vector<8x256xf32>,
    return
  }
  func.func @transform_0(%arg0: i32, %arg1: i32) -> (i32, i32) {
    %c0_i32 = arith.constant 0 : i32
    return %arg0, %arg1 : i32, i32
  }
  func.func @transform_1(%arg0: i32, %arg1: i32) -> (i32, i32) {
    %c0_i32 = arith.constant 0 : i32
    %c0_i32_0 = arith.constant 0 : i32
    return %arg0, %c0_i32 : i32, i32
  }
  func.func @transform_2(%arg0: i32, %arg1: i32) -> (i32, i32) {
    %c0_i32 = arith.constant 0 : i32
    return %arg0, %arg1 : i32, i32
  }
}

</mosaic_0001>

<bundles_post_ra>
// kernel: tpu_custom_call.1
= control target key start
LH: loop header
LB: loop body
LE: loop exit
PB: predicated region body
PF: predicated region fallthrough
CT: control target
= control target key end

     0   :  { %7 = vsyncpa [#allocation3], 0  ;;  %s138_s0 = inlined_call_operand.hbm [shape: f32[8,256], index: 0, kind: input, shape index: {}]   ;;  %s139_s1 = inlined_call_operand.vmem [shape: f32[8,1], index: 1, kind: input, shape index: {}]   ;;  %s140_s2 = inlined_call_operand.hbm [shape: f32[8,256], index: 2, kind: output, shape index: {}]  }
   0x1   :  { %8 = vsyncpa [#allocation4], 0  ;;  %s14_s11 = sshll.u32 %s138_s0, 4  ;;  %s111_s12 = smov [#allocation2]   ;;  %s15_s11 = int_to_ptr.hbm [resolvable:$true] %s14_s11 }
   0x2   :  { %s16_s13 = sshll.u32 %s111_s12, 4  ;;  %s17_s13 = int_to_ptr.vmem [resolvable:$true] %s16_s13 }
   0x3   :  { %19 = dma.hbm_to_vmem [thread:$0]  %s15_s11, 256, %s17_s13, [#allocation3]  }
   0x4   :  { %107 = dma.done.wait [#allocation3], 256  }
   0x5   :  { %108 = vsyncadd [#allocation3], 4294967040  ;;  %v112_v0 = vmov 0   ;;  %v28_v1 = vld [vmem:[%s139_s1] sm:$0xff]  ;;  %v27_v3 = vld [vmem:[#allocation2 + $0x8] sm:$0xff]  ;;  %s113_s16 = smov [#allocation5]  }
   0x6   :  { %58 = vset.pattern.permute.xlu0 %v112_v0  ;;  %v26_v2 = vld [vmem:[#allocation2] sm:$0xff]  ;;  %s43_s17 = sshll.u32 %s113_s16, 4  ;;  %s45_s19 = sshll.u32 %s140_s2, 4  ;;  %s44_s17 = int_to_ptr.vmem [resolvable:$true] %s43_s17  ;;  %s46_s19 = int_to_ptr.hbm [resolvable:$true] %s45_s19 }
   0x7   :  { %31 = vperm.xlu0 %58, %v28_v1  }
  0x79   :  { %v32_v4 = vpop.permute.xlu0 %31 }
  0x7a   :  { %v34_v5 = vmul.f32 %v32_v4, %v26_v2  ;;  %v35_v6 = vmul.f32 %v32_v4, %v27_v3 }
  0x7c   :  { %36 = vst [vmem:[#allocation5] sm:$0xff] %v34_v5 }
  0x7d   :  { %37 = vst [vmem:[#allocation5 + $0x8] sm:$0xff] %v35_v6 }
  0x7e   :  { %48 = dma.vmem_to_hbm [thread:$0]  %s44_s17, 256, %s46_s19, [#allocation4]  }
  0x7f   :  { %109 = dma.done.wait [#allocation4], 256  }
  0x80   :  { %110 = vsyncadd [#allocation4], 4294967040 }
  0x81   :  { %53 = vsyncpa [#allocation3], 1 }
  0x82   :  { %54 = vsyncpa [#allocation4], 1 }

</bundles_post_ra>
